<compile_context>
chip_gen: v7x
topology: tpu7x:2x2x1
jax: 0.10.0
libtpu: 0.0.40
codegen_flags: <defaults>
</compile_context>

<pallas_src>
import functools

import jax
import jax.numpy as jnp
from jax.experimental import pallas as pl
from jax.experimental.pallas import tpu as pltpu


# Below this node count, XLA fusion beats the kernel (grid-step + launch overhead).
_MIN_PALLAS_NODES = 128

# Minimum number of grid steps on the Pallas path: enables writeback pipelining
# and gives the "parallel" axis enough blocks to shard across both v7x TCs.
_MIN_GRID_STEPS = 4

# Live f32 slabs of shape (tm, nodes_pad) per grid step:
#   2 x double-buffered output slab  +  ~2 x in-body intermediates (s, e).
_LIVE_F32_SLABS = 4


def _round_up(x: int, m: int) -> int:
    return ((x + m - 1) // m) * m


def _vmem_limit_bytes() -> int:
    """Generation-aware scoped-VMEM limit (v5e/v6e: 128 MiB phys; v7x: 64 MiB)."""
    phys = None
    try:
        info = pltpu.get_tpu_info()
        phys = getattr(info, "vmem_capacity_bytes", None)
    except Exception:
        phys = None
    if phys is None:
        phys = 64 * 1024 * 1024          # conservative default (v7x-sized)
    if phys >= 128 * 1024 * 1024:        # v5e / v6e
        return 64 * 1024 * 1024
    return 32 * 1024 * 1024              # v7x: stay at the scoped default


def _pick_row_tile(nodes: int, nodes_pad: int, vmem_limit: int) -> int:
    """Row tile sized against VMEM (incl. intermediates) with >= 4 grid steps."""
    max_tile = 1024 if vmem_limit >= 64 * 1024 * 1024 else 512
    slab_budget = vmem_limit - 8 * 1024 * 1024          # headroom: RHS + scratch
    per_row_bytes = _LIVE_F32_SLABS * 4 * nodes_pad
    tm_budget = max(8, (slab_budget // per_row_bytes) // 8 * 8)
    tm_split = _round_up(pl.cdiv(nodes, _MIN_GRID_STEPS), 8)   # >= 4 steps
    tm = max(8, min(max_tile, tm_budget, tm_split))
    # Nudge toward an even grid length so the dual-TC split on v7x is balanced.
    grid = pl.cdiv(nodes, tm)
    if grid > 1 and grid % 2 == 1:
        tm = max(8, _round_up(pl.cdiv(nodes, grid + 1), 8))
    return tm


def _adaptive_adj_kernel(v1_ref, v2_ref, o_ref, *, valid_cols: int):
    """Fused (TM,k)@(k,nodes_pad) matmul -> ReLU -> masked row softmax."""
    # MXU matmul with f32 accumulation (K=10 is tiny; MXU is essentially free).
    s = jnp.dot(v1_ref[...], v2_ref[...], preferred_element_type=jnp.float32)
    # ReLU on the VPU.  Padded columns (zero RHS) give s=0 -> relu 0, and since
    # every real row max is >= 0 after ReLU, they never perturb the row max.
    s = jnp.maximum(s, 0.0)
    m = jnp.max(s, axis=-1, keepdims=True)
    e = jnp.exp(s - m)
    if valid_cols < s.shape[-1]:
        # Zero the lane-padded tail columns before the row-sum / store.
        col = jax.lax.broadcasted_iota(jnp.int32, s.shape, 1)
        e = jnp.where(col < valid_cols, e, 0.0)
    denom = jnp.sum(e, axis=-1, keepdims=True)
    # approx=True -> EUP vrcp slot; one Newton step restores ~exact row sums.
    r = pl.reciprocal(denom, approx=True)
    r = r * (2.0 - denom * r)
    o_ref[...] = (e * r).astype(o_ref.dtype)


def adaptive_matrix_forward(nodevec1: jax.Array,
                            nodevec2: jax.Array,
                            *,
                            row_tile: int | None = None,
                            out_dtype=jnp.float32) -> jax.Array:
    """softmax(relu(nodevec1 @ nodevec2), axis=1) via a row-tiled Pallas kernel.

    nodevec1: (nodes, k) f32
    nodevec2: (k, nodes) f32
    returns:  (nodes, nodes) row-stochastic adaptive adjacency (out_dtype).
    """
    nodes, k = nodevec1.shape
    assert nodevec2.shape == (k, nodes), (nodevec1.shape, nodevec2.shape)

    if nodes < _MIN_PALLAS_NODES:
        # Tiny graphs: let XLA fuse it; the kernel only pays off at 100s of nodes.
        s = jnp.maximum(nodevec1 @ nodevec2, 0.0)
        return jax.nn.softmax(s, axis=1).astype(out_dtype)

    # Lane-pad the output/RHS column dim so every store is an unmasked full vst.
    nodes_pad = _round_up(nodes, 128)
    if nodes_pad != nodes:
        nodevec2 = jnp.pad(nodevec2, ((0, 0), (0, nodes_pad - nodes)))

    vmem_limit = _vmem_limit_bytes()
    if row_tile is not None:
        tm = max(8, _round_up(min(row_tile, nodes), 8))
    else:
        tm = _pick_row_tile(nodes, nodes_pad, vmem_limit)
    grid = (pl.cdiv(nodes, tm),)

    kernel = functools.partial(_adaptive_adj_kernel, valid_cols=nodes)

    cost = pl.CostEstimate(
        flops=2 * nodes * nodes_pad * k,
        transcendentals=nodes * nodes_pad,
        bytes_accessed=4 * (nodes * k + k * nodes_pad) + jnp.dtype(out_dtype).itemsize * nodes * nodes_pad,
    )

    out = pl.pallas_call(
        kernel,
        out_shape=jax.ShapeDtypeStruct((nodes, nodes_pad), out_dtype),
        grid=grid,
        in_specs=[
            # Row tile of the LHS, pipelined across the grid.
            pl.BlockSpec((tm, k), lambda i: (i, 0)),
            # Full RHS: grid-invariant, fetched once, single-buffered (no wasted
            # second VMEM buffer).
            pl.BlockSpec((k, nodes_pad), lambda i: (0, 0),
                         pipeline_mode=pl.Buffered(buffer_count=1)),
        ],
        # Lane-dense (multiple-of-128 last dim) output slab, pipelined writeback.
        out_specs=pl.BlockSpec((tm, nodes_pad), lambda i: (i, 0)),
        compiler_params=pltpu.CompilerParams(
            # Row tiles are independent -> parallel (shards across v7x's 2 TCs).
            dimension_semantics=("parallel",),
            vmem_limit_bytes=vmem_limit,
        ),
        cost_estimate=cost,
    )(nodevec1, nodevec2)

    if nodes_pad != nodes:
        out = out[:, :nodes]
    return out


def reference_forward(nodevec1, nodevec2):
    s = jnp.maximum(nodevec1 @ nodevec2, 0.0)
    return jax.nn.softmax(s, axis=1)


if __name__ == "__main__":
    # Deterministic parameter init mirroring the `adjinit is None` branch:
    #   nodevec1 ~ randn(nodes, 10), nodevec2 ~ randn(10, nodes)
    # TODO(synk): the `adjinit is not None` SVD branch is host-side param init,
    # not forward compute, so it is intentionally not implemented as a kernel.
    emb = 10
    key = jax.random.PRNGKey(0)
    k1, k2, k3, k4, k5, k6 = jax.random.split(key, 6)

    # --- Main case: multiple-of-128 nodes, multi-step parallel grid. ---
    nodes = 256
    nodevec1 = jax.random.normal(k1, (nodes, emb), dtype=jnp.float32)
    nodevec2 = jax.random.normal(k2, (emb, nodes), dtype=jnp.float32)

    run = jax.jit(functools.partial(adaptive_matrix_forward, row_tile=64))
    out = jax.block_until_ready(run(nodevec1, nodevec2))
    ref = reference_forward(nodevec1, nodevec2)
    assert out.shape == (nodes, nodes)
    assert jnp.allclose(out, ref, atol=1e-3, rtol=1e-3), "mismatch vs reference"
    assert jnp.allclose(jnp.sum(out, axis=1), 1.0, atol=1e-3), "rows not stochastic"

    # Default (auto) tiling path as well: >= 4 grid steps by construction.
    out2 = jax.block_until_ready(jax.jit(adaptive_matrix_forward)(nodevec1, nodevec2))
    assert jnp.allclose(out2, ref, atol=1e-3, rtol=1e-3)

    # --- Non-multiple-of-128 case (typical traffic graphs): lane-padded path. ---
    odd_nodes = 200
    ov1 = jax.random.normal(k3, (odd_nodes, emb), dtype=jnp.float32)
    ov2 = jax.random.normal(k4, (emb, odd_nodes), dtype=jnp.float32)
    oout = jax.block_until_ready(jax.jit(adaptive_matrix_forward)(ov1, ov2))
    oref = reference_forward(ov1, ov2)
    assert oout.shape == (odd_nodes, odd_nodes)
    assert jnp.allclose(oout, oref, atol=1e-3, rtol=1e-3), "padded-path mismatch"
    assert jnp.allclose(jnp.sum(oout, axis=1), 1.0, atol=1e-3)

    # --- Tiny-graph case: takes the XLA fallback path. ---
    small_nodes = 16
    sv1 = jax.random.normal(k5, (small_nodes, emb), dtype=jnp.float32)
    sv2 = jax.random.normal(k6, (emb, small_nodes), dtype=jnp.float32)
    small_out = jax.block_until_ready(adaptive_matrix_forward(sv1, sv2))
    assert jnp.allclose(small_out, reference_forward(sv1, sv2), atol=1e-5, rtol=1e-5)

    print("KERNEL_OK")
</pallas_src>

<mosaic_0001>
module attributes {stable_mosaic.version = 11 : i64} {
  func.func @_adaptive_adj_kernel(%arg0: i32, %arg1: memref<64x10xf32, #tpu.memory_space<vmem>>, %arg2: memref<10x256xf32, #tpu.memory_space<vmem>>, %arg3: memref<64x256xf32, #tpu.memory_space<vmem>>) attributes {dimension_semantics = [#tpu.dimension_semantics<parallel>], iteration_bounds = array<i64: 4>, scalar_prefetch = 0 : i64, scratch_operands = 0 : i64, tpu.core_type = #tpu.core_type<tc>, window_params = [{transform_indices = @transform_0, window_bounds = array<i64: 64, 10>}, {pipeline_mode = #tpu.pipeline_mode<synchronous>, transform_indices = @transform_1, window_bounds = array<i64: 10, 256>}, {transform_indices = @transform_2, window_bounds = array<i64: 64, 256>}]} {
    %c0 = arith.constant 0 : index
    %c0_0 = arith.constant 0 : index
    %0 = vector.load %arg1[%c0, %c0_0] : memref<64x10xf32, #tpu.memory_space<vmem>>, vector<64x10xf32>
    %c0_1 = arith.constant 0 : index
    %c0_2 = arith.constant 0 : index
    %1 = vector.load %arg2[%c0_1, %c0_2] : memref<10x256xf32, #tpu.memory_space<vmem>>, vector<10x256xf32>
    %cst = arith.constant dense<0.000000e+00> : vector<64x256xf32>
    %2 = tpu.matmul %0, %1, %cst {dimension_numbers = #tpu.dot_dimension_numbers<[1], [0], [0], [1], [0, 0, 1, 1], [], []>} : vector<64x10xf32>, vector<10x256xf32>, vector<64x256xf32> -> vector<64x256xf32>
    %cst_3 = arith.constant 0.000000e+00 : f32
    %3 = vector.broadcast %cst_3 : f32 to vector<64x256xf32>
    %4 = arith.maximumf %2, %3 : vector<64x256xf32>
    %cst_4 = arith.constant dense<0xFF800000> : vector<64xf32>
    %5 = vector.multi_reduction <maximumf>, %4, %cst_4 [1] : vector<64x256xf32> to vector<64xf32>
    %6 = vector.shape_cast %5 : vector<64xf32> to vector<64x1xf32>
    %7 = vector.broadcast %6 : vector<64x1xf32> to vector<64x256xf32>
    %8 = arith.subf %4, %7 : vector<64x256xf32>
    %9 = math.exp %8 : vector<64x256xf32>
    %cst_5 = arith.constant dense<0.000000e+00> : vector<64xf32>
    %10 = vector.multi_reduction <add>, %9, %cst_5 [1] : vector<64x256xf32> to vector<64xf32>
    %11 = vector.shape_cast %10 : vector<64xf32> to vector<64x1xf32>
    %12 = tpu.reciprocal %11 {approx = true} : vector<64x1xf32> -> vector<64x1xf32>
    %13 = arith.mulf %11, %12 : vector<64x1xf32>
    %cst_6 = arith.constant 2.000000e+00 : f32
    %14 = vector.broadcast %cst_6 : f32 to vector<64x1xf32>
    %15 = arith.subf %14, %13 : vector<64x1xf32>
    %16 = arith.mulf %12, %15 : vector<64x1xf32>
    %17 = vector.broadcast %16 : vector<64x1xf32> to vector<64x256xf32>
    %18 = arith.mulf %9, %17 : vector<64x256xf32>
    %c0_7 = arith.constant 0 : index
    %c0_8 = arith.constant 0 : index
    %19 = vector.load %arg3[%c0_7, %c0_8] : memref<64x256xf32, #tpu.memory_space<vmem>>, vector<64x256xf32>
    tpu.vector_store %arg3[%c0_7, %c0_8], %18 {strides = array<i32>} : memref<64x256xf32, #tpu.memory_space<vmem>>, vector<64x256xf32>,
    return
  }
  func.func @transform_0(%arg0: i32) -> (i32, i32) {
    %c0_i32 = arith.constant 0 : i32
    %c0_i32_0 = arith.constant 0 : i32
    return %arg0, %c0_i32 : i32, i32
  }
  func.func @transform_1(%arg0: i32) -> (i32, i32) {
    %c0_i32 = arith.constant 0 : i32
    %c0_i32_0 = arith.constant 0 : i32
    %c0_i32_1 = arith.constant 0 : i32
    return %c0_i32, %c0_i32_0 : i32, i32
  }
  func.func @transform_2(%arg0: i32) -> (i32, i32) {
    %c0_i32 = arith.constant 0 : i32
    %c0_i32_0 = arith.constant 0 : i32
    return %arg0, %c0_i32 : i32, i32
  }
}

</mosaic_0001>

<bundles_post_ra>
// kernel: adaptive_matrix_forward.1
= control target key start
LH: loop header
LB: loop body
LE: loop exit
PB: predicated region body
PF: predicated region fallthrough
CT: control target
= control target key end

     0   :  { %7 = vsyncpa [#allocation3], 0  ;;  %s978_s0 = inlined_call_operand.vmem [shape: f32[256,10], index: 0, kind: input, shape index: {}]   ;;  %s979_s1 = inlined_call_operand.vmem [shape: f32[10,256], index: 1, kind: input, shape index: {}]   ;;  %s980_s2 = inlined_call_operand.hbm [shape: f32[256,256], index: 2, kind: output, shape index: {}]  }
   0x1   :  { %9 = vsyncpa [#allocation3 + $0x1], 0  ;;  %s763_s9 = smov 0   ;;  %s765_s10 = smov 0  }
   0x2   :  { %s767_s11 = smov 0   ;;  %s769_s12 = smov 0  }
   0x3 LB: > { %s784_s13 = sadd.s32 4294967295, %s741_s12   ;;  %s555_s14 = sadd.s32 4294967294, %s741_s12   ;;  %s741_s12 = sphi %s769_s12, %s986_s12   ;;  %s737_s11 = sphi %s767_s11, %s985_s11   ;;  %s733_s10 = sphi %s765_s10, %s984_s10   ;;  %s729_s9 = sphi %s763_s9, %s983_s9  }
   0x4   : > { %s788_s15 = sadd.s32 1, %s741_s12   ;;  %s69_s16 = sadd.s32 1, %s737_s11 }
   0x5   : > { %s66_s17 = ssub.s32 %s741_s12, %s788_s15  ;;  %p79_p0 = scmp.ne.s32.totalorder %s737_s11, %s733_s10 }
   0x6   : > { %p67_p1 = scmp.eq.s32.totalorder %s66_s17, 0  ;;  %p80_p2 = scmp.eq.s32.totalorder %s784_s13, 3 }
   0x7   : > { %p85_p3 = scmp.ne.s32.totalorder %s733_s10, %s729_s9  ;;  %p86_p4 = scmp.eq.s32.totalorder %s555_s14, 3 }
   0x8   : > { %s799_s18 = scalar_select %p67_p1, %s737_s11, %s69_s16  }
   0x9   : > { %p801_p5 = por %p80_p2, %p79_p0  ;;  %p805_p6 = por %p86_p4, %p85_p3 }
   0xa   : > { %p558_p7 = scmp.ge.s32.totalorder %s741_s12, 1  ;;  %p116_p8 = scmp.lt.s32.totalorder %s741_s12, 5 }
   0xc   : > { %p117_p9 = pnand %p558_p7, %p116_p8 }
   0xd   : > { %v154_v0 = vld [vmem:[%s979_s1 + $0x8] sm:$0xff] (!%p117_p9)  ;;  %v156_v1 = vld [vmem:[%s979_s1 + $0x18] sm:$0x3] (!%p117_p9)  ;;  %vm182_vm0 = vcmask (!%p117_p9), 1041408   ;;  %v153_v2 = vld [vmem:[%s979_s1] sm:$0xff] (!%p117_p9)  ;;  %vm743_vm1 = vmmov (!%p117_p9), 1  }
   0xe   : > { %120 = sbr.rel (%p117_p9) target bundleno = 599 (0x257), region = 28  ;;  %v580_v3 = vpack.c.bf16 (!%p117_p9), %v156_v1, %v154_v0  ;;  %vm581_vm2 = vmpackc.low (!%p117_p9), %vm182_vm0, %vm743_vm1  ;;  %v155_v4 = vld [vmem:[%s979_s1 + $0x10] sm:$0x3] (!%p117_p9)  ;;  %s560_s29 = sshll.u32 (!%p117_p9), %s784_s13, 3  ;;  %v744_v6 = vmov (!%p117_p9), 0.0   ;;  %vm157_vm3 = vcmask (!%p117_p9), 80896  }
   0xf   : > { %v583_v5 = vpack.c.bf16 (!%p117_p9), %v155_v4, %v153_v2  ;;  %253 = vmatprep.mubr.f32.mxu0 (!%p117_p9), %v744_v6  ;;  %277 = vmatprep.mubr.f32.mxu1 (!%p117_p9), %v744_v6  ;;  %p139_p10 = scmp.lt.s32.totalorder (!%p117_p9), %s560_s29, 31  ;;  %s135_s6 = sand.u32 (!%p117_p9), 1, %s733_s10  }
  0x10   : > { %582 = vmatprep.subr.msk.bf16.mxu0 (!%p117_p9), %vm581_vm2, %v580_v3  ;;  %586 = vmatprep.subr.msk.bf16.mxu1 (!%p117_p9), %vm581_vm2, %v580_v3  ;;  %s559_s7 = sshll.u32 (!%p117_p9), %s135_s6, 7  ;;  %s579_s14 = sshll.u32 (!%p117_p9), %s784_s13, 11 }
  0x11   : > { %585 = vmatpush1.bf16.msk.msra.mxu0 (!%p117_p9), %vm581_vm2, %v583_v5  ;;  %587 = vmatpush1.bf16.msk.msra.mxu1 (!%p117_p9), %vm581_vm2, %v583_v5  ;;  %s894_s8 = scalar_lea.vmem (!%p117_p9), [#allocation2], %s559_s7  ;;  %s927_s22 = scalar_lea.hbm (!%p117_p9), %s980_s2, %s579_s14 }
  0x12   : > { %s493_s16 = sshll.u32 (!%p117_p9), %s894_s8, 4  ;;  %s937_s13 = scalar_lea.sflag (!%p117_p9), [#allocation3], %s135_s6  ;;  %s929_s16 = int_to_ptr.vmem [resolvable:$true] %s493_s16 }
  0x13   : > { %s679_s23 = scalar_lea.vmem (!%p117_p9), %s929_s16, 2048  ;;  %s745_s24 = smov (!%p117_p9), [#allocation2]  }
  0x14   : > { %p680_p11 = scmp.ne.s32.totalorder (!%p117_p9), %s929_s16, %s679_s23  ;;  %s683_s25 = sshll.u32 (!%p117_p9), %s745_s24, 4  ;;  %s684_s25 = int_to_ptr.vmem [resolvable:$false] %s683_s25 }
  0x15   : > { %s988_s29 = smov (!%p139_p10, %s560_s29), 31  ;;  %s685_s26 = scalar_lea.vmem %s684_s25, 4096 }
  0x16   : > { %s561_s30 = sshll.u32 %s988_s29, 3  ;;  %p681_p12 = pnand %p680_p11, %p801_p5 }
  0x17   : > { %s142_s5 = scalar_lea.vmem %s978_s0, %s561_s30  ;;  %p686_p0 = scmp.lt.s32.totalorder %s929_s16, %s684_s25 }
  0x18   : > { %v145_v7 = vld [vmem:[%s142_s5] sm:$0xff]  ;;  %v146_v9 = vld [vmem:[%s142_s5 + $0x8] sm:$0xff]  ;;  %v147_v11 = vld [vmem:[%s142_s5 + $0x10] sm:$0xff]  ;;  %p682_p13 = pneg %p681_p12  ;;  %p687_p1 = scmp.lt.s32.totalorder %s685_s26, %s679_s23 }
  0x19   : > { %v149_v8 = vld [vmem:[%s142_s5 + $0x20] sm:$0xff]  ;;  %564 = vmatmul.mubr.msk.f32.vlgmr.msra.gmra.mrb[0].mxu0 %vm157_vm3, %v145_v7  ;;  %v150_v10 = vld [vmem:[%s142_s5 + $0x28] sm:$0xff]  ;;  %v151_v12 = vld [vmem:[%s142_s5 + $0x30] sm:$0xff] }
  0x1a   : > { %568 = vmatmul.mubr.msk.f32.vlgmr.msra.gmra.mrb[0].mxu1 %vm157_vm3, %v149_v8  ;;  %259 = vmatprep.mubr.f32.mxu0 %v744_v6  ;;  %v148_v13 = vld [vmem:[%s142_s5 + $0x18] sm:$0xff]  ;;  %p688_p2 = por %p687_p1, %p686_p0 }
  0x1b   : > { %283 = vmatprep.mubr.f32.mxu1 %v744_v6  ;;  %v152_v14 = vld [vmem:[%s142_s5 + $0x38] sm:$0xff] }
  0x1c   : > { %p689_p3 = pnand %p688_p2, %p682_p13 }
  0x1d   : > { %565 = vmatmul.mubr.msk.f32.gmra.mrb[2].mxu0 %vm157_vm3, %v146_v9 }
  0x1e   : > { %569 = vmatmul.mubr.msk.f32.gmra.mrb[2].mxu1 %vm157_vm3, %v150_v10  ;;  %265 = vmatprep.mubr.f32.mxu0 %v744_v6 }
  0x1f   : > { %289 = vmatprep.mubr.f32.mxu1 %v744_v6 }
  0x21   : > { %566 = vmatmul.mubr.msk.f32.gmra.mrb[4].mxu0 %vm157_vm3, %v147_v11 }
  0x22   : > { %570 = vmatmul.mubr.msk.f32.gmra.mrb[4].mxu1 %vm157_vm3, %v151_v12  ;;  %271 = vmatprep.mubr.f32.mxu0 %v744_v6 }
  0x23   : > { %295 = vmatprep.mubr.f32.mxu1 %v744_v6 }
  0x25   : > { %567 = vmatmul.mubr.msk.f32.gmra.mrb[6].mxu0 %vm157_vm3, %v148_v13 }
  0x26   : > { %571 = vmatmul.mubr.msk.f32.gmra.mrb[6].mxu1 %vm157_vm3, %v152_v14 }
  0xec   : > { %v255_v15 = vpop.f32.mrb[0].mxu0 }
  0xed   : > { %v279_v16 = vpop.f32.mrb[0].mxu1  ;;  %v302_v17 = vmax.f32 %v255_v15, 0.0  ;;  %v257_v18 = vpop.f32.mrb[1].mxu0 }
  0xee   : > { %v281_v19 = vpop.f32.mrb[1].mxu1  ;;  %v303_v20 = vmax.f32 %v257_v18, 0.0  ;;  %v310_v21 = vmax.f32 %v279_v16, 0.0 }
  0xef   : > { %v311_v22 = vmax.f32 %v281_v19, 0.0 }
  0xf0   : > { %v318_v24 = vmax.f32 %v302_v17, %v303_v20  ;;  %v261_v25 = vpop.f32.mrb[2].mxu0 }
  0xf1   : > { %v285_v23 = vpop.f32.mrb[2].mxu1  ;;  %v263_v28 = vpop.f32.mrb[3].mxu0  ;;  %v304_v30 = vmax.f32 %v261_v25, 0.0  ;;  %v330_v32 = vmax.f32 %v310_v21, %v311_v22 }
  0xf2   : > { %v312_v26 = vmax.f32 %v285_v23, 0.0  ;;  %v287_v27 = vpop.f32.mrb[3].mxu1  ;;  %319 = vmax.xlane.f32.xlu0 %v318_v24  ;;  %v305_v31 = vmax.f32 %v263_v28, 0.0 }
  0xf3   : > { %v313_v29 = vmax.f32 %v287_v27, 0.0 }
  0xf4   : > { %v267_v33 = vpop.f32.mrb[4].mxu0  ;;  %v321_v42 = vmax.f32 %v304_v30, %v305_v31 }
  0xf5   : > { %v333_v34 = vmax.f32 %v312_v26, %v313_v29  ;;  %v291_v35 = vpop.f32.mrb[4].mxu1  ;;  %v306_v36 = vmax.f32 %v267_v33, 0.0  ;;  %v269_v37 = vpop.f32.mrb[5].mxu0 }
  0xf6   : > { %v293_v38 = vpop.f32.mrb[5].mxu1  ;;  %v307_v39 = vmax.f32 %v269_v37, 0.0  ;;  %331 = vmax.xlane.f32.xlu0 %v330_v32  ;;  %v314_v40 = vmax.f32 %v291_v35, 0.0 }
  0xf7   : > { %334 = vmax.xlane.f32.xlu1 %v333_v34  ;;  %v315_v41 = vmax.f32 %v293_v38, 0.0 }
  0xf8   : > { %v273_v43 = vpop.f32.mrb[6].mxu0  ;;  %v324_v44 = vmax.f32 %v306_v36, %v307_v39 }
  0xf9   : > { %v835_v45 = vpop.f32.mrb[6].mxu1  ;;  %v308_v46 = vmax.f32 %v273_v43, 0.0  ;;  %v275_v47 = vpop.f32.mrb[7].mxu0  ;;  %v336_v52 = vmax.f32 %v314_v40, %v315_v41 }
  0xfa   : > { %v837_v48 = vpop.f32.mrb[7].mxu1  ;;  %v309_v49 = vmax.f32 %v275_v47, 0.0  ;;  %322 = vmax.xlane.f32.xlu0 %v321_v42  ;;  %v316_v50 = vmax.f32 %v835_v45, 0.0 }
  0xfb   : > { %325 = vmax.xlane.f32.xlu1 %v324_v44  ;;  %v317_v51 = vmax.f32 %v837_v48, 0.0 }
  0xfc   : > { %v327_v53 = vmax.f32 %v308_v46, %v309_v49 }
  0xfd   : > { %v339_v54 = vmax.f32 %v316_v50, %v317_v51 }
  0xfe   : > { %337 = vmax.xlane.f32.xlu0 %v336_v52 }
  0xff   : > { %328 = vmax.xlane.f32.xlu1 %v327_v53 }
 0x103   : > { %340 = vmax.xlane.f32.xlu1 %v339_v54 }
 0x17f   : > { %v320_v55 = vpop.xlane.xlu0 %319 }
 0x180   : > { %v342_v56 = vsub.f32 %v302_v17, %v320_v55  ;;  %v343_v57 = vsub.f32 %v303_v20, %v320_v55 }
 0x182   : > { %v358_v58 = vmul.f32 1.442695, %v342_v56  ;;  %v360_v59 = vmul.f32 1.442695, %v343_v57 }
 0x183   : > { %v332_v61 = vpop.xlane.xlu0 %331 }
 0x184   : > { %v335_v60 = vpop.xlane.xlu1 %334  ;;  %631 = vpow2.f32 %v358_v58  ;;  %v350_v0 = vsub.f32 %v310_v21, %v332_v61  ;;  %v351_v1 = vsub.f32 %v311_v22, %v332_v61 }
 0x185   : > { %v352_v62 = vsub.f32 %v312_v26, %v335_v60  ;;  %v353_v63 = vsub.f32 %v313_v29, %v335_v60  ;;  %633 = vpow2.f32 %v360_v59 }
 0x186   : > { %v374_v4 = vmul.f32 1.442695, %v350_v0  ;;  %v376_v5 = vmul.f32 1.442695, %v351_v1 }
 0x187   : > { %v378_v2 = vmul.f32 1.442695, %v352_v62  ;;  %v380_v3 = vmul.f32 1.442695, %v353_v63  ;;  %v323_v6 = vpop.xlane.xlu0 %322 }
 0x188   : > { %v326_v7 = vpop.xlane.xlu1 %325  ;;  %v344_v8 = vsub.f32 %v304_v30, %v323_v6  ;;  %v345_v9 = vsub.f32 %v305_v31, %v323_v6 }
 0x189   : > { %635 = vpow2.f32 %v378_v2  ;;  %v346_v10 = vsub.f32 %v306_v36, %v326_v7  ;;  %v347_v11 = vsub.f32 %v307_v39, %v326_v7 }
 0x18a   : > { %637 = vpow2.f32 %v380_v3  ;;  %v362_v12 = vmul.f32 1.442695, %v344_v8  ;;  %v364_v13 = vmul.f32 1.442695, %v345_v9 }
 0x18b   : > { %639 = vpow2.f32 %v374_v4  ;;  %v366_v14 = vmul.f32 1.442695, %v346_v10  ;;  %v368_v15 = vmul.f32 1.442695, %v347_v11  ;;  %v338_v16 = vpop.xlane.xlu0 %337 }
 0x18c   : > { %641 = vpow2.f32 %v376_v5  ;;  %v329_v17 = vpop.xlane.xlu1 %328  ;;  %v354_v18 = vsub.f32 %v314_v40, %v338_v16  ;;  %v355_v19 = vsub.f32 %v315_v41, %v338_v16 }
 0x18d   : > { %643 = vpow2.f32 %v362_v12  ;;  %v348_v20 = vsub.f32 %v308_v46, %v329_v17  ;;  %v349_v21 = vsub.f32 %v309_v49, %v329_v17 }
 0x18e   : > { %645 = vpow2.f32 %v364_v13  ;;  %v841_v22 = vpop.eup %631  ;;  %v382_v23 = vmul.f32 1.442695, %v354_v18  ;;  %v384_v24 = vmul.f32 1.442695, %v355_v19 }
 0x18f   : > { %647 = vpow2.f32 %v366_v14  ;;  %v370_v25 = vmul.f32 1.442695, %v348_v20  ;;  %v843_v26 = vpop.eup %633  ;;  %v372_v27 = vmul.f32 1.442695, %v349_v21 }
 0x190   : > { %649 = vpow2.f32 %v368_v15  ;;  %v341_v28 = vpop.xlane.xlu1 %340  ;;  %v390_v31 = vadd.f32 %v843_v26, %v841_v22 }
 0x191   : > { %651 = vpow2.f32 %v382_v23  ;;  %v356_v29 = vsub.f32 %v316_v50, %v341_v28  ;;  %v357_v30 = vsub.f32 %v317_v51, %v341_v28 }
 0x192   : > { %653 = vpow2.f32 %v384_v24  ;;  %391 = vadd.xlane.f32.xlu0 %v390_v31 }
 0x193   : > { %v847_v32 = vpop.eup %635  ;;  %655 = vpow2.f32 %v370_v25  ;;  %v386_v33 = vmul.f32 1.442695, %v356_v29  ;;  %v388_v35 = vmul.f32 1.442695, %v357_v30 }
 0x194   : > { %v849_v34 = vpop.eup %637  ;;  %657 = vpow2.f32 %v372_v27 }
 0x195   : > { %v851_v36 = vpop.eup %639  ;;  %659 = vpow2.f32 %v386_v33  ;;  %v405_v49 = vadd.f32 %v849_v34, %v847_v32 }
 0x196   : > { %v853_v37 = vpop.eup %641  ;;  %661 = vpow2.f32 %v388_v35 }
 0x197   : > { %v855_v38 = vpop.eup %643  ;;  %v402_v39 = vadd.f32 %v853_v37, %v851_v36 }
 0x198   : > { %v859_v40 = vpop.eup %645 }
 0x199   : > { %v861_v41 = vpop.eup %647  ;;  %403 = vadd.xlane.f32.xlu0 %v402_v39  ;;  %v393_v42 = vadd.f32 %v859_v40, %v855_v38 }
 0x19a   : > { %v865_v43 = vpop.eup %649 }
 0x19b   : > { %v867_v44 = vpop.eup %651  ;;  %v396_v45 = vadd.f32 %v865_v43, %v861_v41  ;;  %394 = vadd.xlane.f32.xlu1 %v393_v42 }
 0x19c   : > { %v871_v46 = vpop.eup %653 }
 0x19d   : > { %v873_v47 = vpop.eup %655  ;;  %397 = vadd.xlane.f32.xlu0 %v396_v45  ;;  %v408_v48 = vadd.f32 %v871_v46, %v867_v44 }
 0x19e   : > { %v879_v50 = vpop.eup %657 }
 0x19f   : > { %406 = vadd.xlane.f32.xlu1 %v405_v49  ;;  %v881_v51 = vpop.eup %659  ;;  %v399_v52 = vadd.f32 %v879_v50, %v873_v47 }
 0x1a0   : > { %v885_v53 = vpop.eup %661 }
 0x1a1   : > { %409 = vadd.xlane.f32.xlu0 %v408_v48  ;;  %v411_v54 = vadd.f32 %v885_v53, %v881_v51 }
 0x1a3   : > { %400 = vadd.xlane.f32.xlu1 %v399_v52 }
 0x1a7   : > { %412 = vadd.xlane.f32.xlu1 %v411_v54 }
 0x21f   : > { %v392_v55 = vpop.xlane.xlu0 %391 }
 0x220   : > { %663 = vrcp.f32 %v392_v55 }
 0x226   : > { %v404_v56 = vpop.xlane.xlu0 %403 }
 0x227   : > { %665 = vrcp.f32 %v404_v56 }
 0x228   : > { %v395_v57 = vpop.xlane.xlu1 %394 }
 0x229   : > { %667 = vrcp.f32 %v395_v57 }
 0x22a   : > { %v398_v58 = vpop.xlane.xlu0 %397  ;;  %v664_v59 = vpop.eup %663 }
 0x22b   : > { %669 = vrcp.f32 %v398_v58  ;;  %v422_v60 = vmul.f32 %v664_v59, %v392_v55 }
 0x22c   : > { %v407_v61 = vpop.xlane.xlu1 %406 }
 0x22d   : > { %671 = vrcp.f32 %v407_v61  ;;  %v430_v62 = vsub.f32 2.0, %v422_v60 }
 0x22e   : > { %v410_v63 = vpop.xlane.xlu0 %409 }
 0x22f   : > { %673 = vrcp.f32 %v410_v63  ;;  %v438_v0 = vmul.f32 %v664_v59, %v430_v62 }
 0x230   : > { %v401_v1 = vpop.xlane.xlu1 %400 }
 0x231   : > { %v666_v2 = vpop.eup %665  ;;  %675 = vrcp.f32 %v401_v1  ;;  %v446_v3 = vmul.f32 %v841_v22, %v438_v0  ;;  %v447_v4 = vmul.f32 %v843_v26, %v438_v0 }
 0x232   : > { %v426_v5 = vmul.f32 %v666_v2, %v404_v56 }
 0x233   : > { %v668_v6 = vpop.eup %667  ;;  %462 = vst [vmem:[%s894_s8] sm:$0xff] %v446_v3  ;;  %463 = vst [vmem:[%s894_s8 + $0x8] sm:$0xff] %v447_v4 }
 0x234   : > { %v434_v7 = vsub.f32 2.0, %v426_v5  ;;  %v423_v8 = vmul.f32 %v668_v6, %v395_v57  ;;  %v413_v9 = vpop.xlane.xlu1 %412 }
 0x235   : > { %v670_v10 = vpop.eup %669  ;;  %677 = vrcp.f32 %v413_v9 }
 0x236   : > { %v442_v11 = vmul.f32 %v666_v2, %v434_v7  ;;  %v424_v12 = vmul.f32 %v670_v10, %v398_v58  ;;  %v431_v13 = vsub.f32 2.0, %v423_v8 }
 0x237   : > { %v672_v14 = vpop.eup %671 }
 0x238   : > { %v454_v15 = vmul.f32 %v851_v36, %v442_v11  ;;  %v455_v16 = vmul.f32 %v853_v37, %v442_v11  ;;  %v432_v17 = vsub.f32 2.0, %v424_v12  ;;  %v439_v18 = vmul.f32 %v668_v6, %v431_v13 }
 0x239   : > { %v674_v19 = vpop.eup %673  ;;  %v427_v20 = vmul.f32 %v672_v14, %v407_v61 }
 0x23a   : > { %470 = vst [vmem:[%s894_s8 + $0x40] sm:$0xff] %v454_v15  ;;  %471 = vst [vmem:[%s894_s8 + $0x48] sm:$0xff] %v455_v16  ;;  %v440_v21 = vmul.f32 %v670_v10, %v432_v17  ;;  %v448_v22 = vmul.f32 %v855_v38, %v439_v18  ;;  %v449_v23 = vmul.f32 %v859_v40, %v439_v18 }
 0x23b   : > { %v428_v24 = vmul.f32 %v674_v19, %v410_v63  ;;  %v676_v25 = vpop.eup %675  ;;  %v435_v26 = vsub.f32 2.0, %v427_v20 }
 0x23c   : > { %v450_v27 = vmul.f32 %v861_v41, %v440_v21  ;;  %v451_v28 = vmul.f32 %v865_v43, %v440_v21  ;;  %464 = vst [vmem:[%s894_s8 + $0x10] sm:$0xff] %v448_v22  ;;  %465 = vst [vmem:[%s894_s8 + $0x18] sm:$0xff] %v449_v23  ;;  %v425_v30 = vmul.f32 %v676_v25, %v401_v1 }
 0x23d   : > { %v436_v29 = vsub.f32 2.0, %v428_v24  ;;  %v443_v31 = vmul.f32 %v672_v14, %v435_v26 }
 0x23e   : > { %466 = vst [vmem:[%s894_s8 + $0x20] sm:$0xff] %v450_v27  ;;  %467 = vst [vmem:[%s894_s8 + $0x28] sm:$0xff] %v451_v28  ;;  %v433_v35 = vsub.f32 2.0, %v425_v30 }
 0x23f   : > { %v444_v33 = vmul.f32 %v674_v19, %v436_v29  ;;  %v678_v36 = vpop.eup %677  ;;  %v456_v37 = vmul.f32 %v847_v32, %v443_v31  ;;  %v457_v38 = vmul.f32 %v849_v34, %v443_v31 }
 0x240   : > { %v441_v41 = vmul.f32 %v676_v25, %v433_v35  ;;  %v429_v42 = vmul.f32 %v678_v36, %v413_v9 }
 0x241   : > { %v458_v39 = vmul.f32 %v867_v44, %v444_v33  ;;  %v459_v40 = vmul.f32 %v871_v46, %v444_v33  ;;  %472 = vst [vmem:[%s894_s8 + $0x50] sm:$0xff] %v456_v37  ;;  %473 = vst [vmem:[%s894_s8 + $0x58] sm:$0xff] %v457_v38 }
 0x242   : > { %v452_v43 = vmul.f32 %v873_v47, %v441_v41  ;;  %v453_v32 = vmul.f32 %v879_v50, %v441_v41  ;;  %v437_v45 = vsub.f32 2.0, %v429_v42 }
 0x243   : > { %474 = vst [vmem:[%s894_s8 + $0x60] sm:$0xff] %v458_v39  ;;  %475 = vst [vmem:[%s894_s8 + $0x68] sm:$0xff] %v459_v40 }
 0x244   : > { %468 = vst [vmem:[%s894_s8 + $0x30] sm:$0xff] %v452_v43  ;;  %469 = vst [vmem:[%s894_s8 + $0x38] sm:$0xff] %v453_v32  ;;  %v445_v34 = vmul.f32 %v678_v36, %v437_v45 }
 0x246   : > { %v460_v44 = vmul.f32 %v881_v51, %v445_v34  ;;  %v461_v46 = vmul.f32 %v885_v53, %v445_v34 }
 0x248   : > { %476 = vst [vmem:[%s894_s8 + $0x70] sm:$0xff] %v460_v44  ;;  %477 = vst [vmem:[%s894_s8 + $0x78] sm:$0xff] %v461_v46 }
 0x249   : > { %692 = shalt.err (!%p689_p3)
}
 0x24a   : > { %s693_s27 = scalar_lea.hbm %s927_s22, 2048  ;;  %s697_s30 = scalar_lea.hbm %s980_s2, 8192 }
 0x24b   : > { %p694_p4 = scmp.ne.s32.totalorder %s927_s22, %s693_s27  ;;  %p698_p9 = scmp.lt.u32.totalorder %s927_s22, %s980_s2 }
 0x24c   : > { %p699_p10 = scmp.lt.u32.totalorder %s697_s30, %s693_s27  ;;  %p701_p12 = scmp.lt.u32.totalorder %s693_s27, %s927_s22 }
 0x24d   : > { %p695_p7 = pnand %p694_p4, %p801_p5 }
 0x24e   : > { %p700_p11 = por %p699_p10, %p698_p9 }
 0x24f   : > { %p696_p8 = pneg %p695_p7 }
 0x250   : > { %p702_p13 = por %p701_p12, %p700_p11 }
 0x252   : > { %p703_p0 = pnand %p702_p13, %p696_p8 }
 0x254   : > { %706 = shalt.err (!%p703_p0)
}
 0x255   : > { %s746_s5 = smov 256   ;;  %s747_s6 = smov 16  }
 0x256   : > { %588 = dma.vmem_to_hbm [thread:$0]  (%p801_p5), %s929_s16, 2048, %s927_s22, %s937_s13, %s746_s5, %s746_s5, %s747_s6  }
 0x257 PF: > { %p594_p1 = scmp.ge.s32.totalorder %s741_s12, 2  ;;  %s508_s7 = sand.u32 1, %s729_s9  }
 0x258   : > { %s509_s8 = scalar_lea.sflag [#allocation3], %s508_s7 }
 0x259   : > { %p591_p2 = pnand %p594_p1, %p805_p6 }
 0x25b   : > { %724 = dma.done.wait (!%p591_p2), %s509_s8, 2048  }
 0x25c   : > { %726 = vsyncadd (!%p591_p2), %s509_s8, 4294965248  ;;  %p12_p3 = scmp.ge.s32.totalorder %s788_s15, 6   ;;  %s983_s9 = smov %s733_s10 }
 0x25d   : > { %s984_s10 = smov %s737_s11  ;;  %s985_s11 = smov %s799_s18 }
 0x25e   : > { %s986_s12 = smov %s788_s15  ;;  %14 = sbr.rel (!%p12_p3) target bundleno = 3 (0x3), region = 63 }
 0x265   :  { %514 = vsyncpa [#allocation3], 1 }
 0x266   :  { %516 = vsyncpa [#allocation3 + $0x1], 1 }

</bundles_post_ra>
